<compile_context>
chip_gen: v7x
topology: tpu7x:2x2x1
jax: 0.10.0
libtpu: 0.0.40
codegen_flags: <defaults>
</compile_context>

<pallas_src>
import numpy as np
import jax
import jax.numpy as jnp
from jax import lax
from jax.experimental import pallas as pl
from jax.experimental.pallas import tpu as pltpu


def _project_kernel(x_ref, t_ref, m_ref):
    """One row-tile of M = x @ T_perm (f32 accumulation)."""
    m_ref[...] = jnp.dot(x_ref[...], t_ref[...],
                         preferred_element_type=jnp.float32)


def _make_pairwise_kernel(N, B_dim, C_dim, TI, TJ):
    """Kernel for one (i-tile, j-tile) grid step of the pairwise reduction."""
    ragged_j = (N % TJ) != 0

    def kernel(mi_ref, mj_ref, o_ref):
        j = pl.program_id(1)

        # New i-tile: zero the resident accumulator (the output block index is
        # the same across the j axis).
        @pl.when(j == 0)
        def _init():
            o_ref[...] = jnp.zeros_like(o_ref)

        mi = mi_ref[...]                                  # (TI, C*B) f32
        j_base = j * TJ

        def body(r, acc):
            # Dynamic VMEM load of one M_j row, sublane-broadcast against M_i.
            mj_r = mj_ref[pl.ds(r, 1), :]                 # (1, C*B)
            d = jnp.abs(mi - mj_r)                        # (TI, C*B)
            # Columns are (c,b)-major: the group-b L1 sum over C is C-1 adds
            # of contiguous B-wide lane slabs (no MXU, no reshape).
            s = d[:, :B_dim]
            for c in range(1, C_dim):
                s = s + d[:, c * B_dim:(c + 1) * B_dim]   # (TI, B)
            contrib = jnp.exp(-s)                         # (TI, B)
            if ragged_j:
                # Scalar-condition mask for OOB rows of the last j-tile
                # (jnp.where is NaN-safe against stale padded VMEM contents).
                contrib = jnp.where(j_base + r < N, contrib, 0.0)
            return acc + contrib

        acc0 = jnp.zeros((TI, B_dim), dtype=jnp.float32)
        unroll = True if TJ <= 8 else 8
        acc = lax.fori_loop(0, TJ, body, acc0, unroll=unroll)
        o_ref[...] += acc

    return kernel


def minibatch_discriminator_pallas(inp_nchw, T, B_dim, C_dim, *,
                                   compute_dtype=jnp.bfloat16,
                                   row_tile=128):
    """Forward pass of minibatch_discriminator.

    inp_nchw: (N, num_channels, 4, 4) float32 (NCHW, as in the PyTorch module)
    T:        (num_channels*16, B_dim*C_dim) float32 parameter
    compute_dtype: dtype fed to the MXU for x @ T (accumulation and the
        abs/exp path stay in float32).
    """
    N = inp_nchw.shape[0]
    F = inp_nchw.shape[1] * inp_nchw.shape[2] * inp_nchw.shape[3]
    BC = B_dim * C_dim
    assert T.shape == (F, BC), (T.shape, (F, BC))

    # Flatten exactly like torch's .view on a contiguous NCHW tensor.
    x_flat = inp_nchw.reshape(N, F).astype(jnp.float32)

    # Host-side column permutation of T: new column c*B + b holds old column
    # b*C + c, so group b lives at lane b of each of the C contiguous B-wide
    # slabs of M = x @ T_perm.
    col = np.arange(BC)
    perm = jnp.asarray((col % B_dim) * C_dim + (col // B_dim))
    t_perm = jnp.take(T, perm, axis=1).astype(compute_dtype)

    x_in = x_flat.astype(compute_dtype)

    # Row tile: full dim for small N, otherwise a multiple of 8 (block rule).
    TM = N if N <= row_tile else row_tile

    # ---- Kernel 1: M = x @ T_perm, computed once, f32 output -------------
    M = pl.pallas_call(
        _project_kernel,
        out_shape=jax.ShapeDtypeStruct((N, BC), jnp.float32),
        grid_spec=pltpu.PrefetchScalarGridSpec(
            num_scalar_prefetch=0,
            grid=(pl.cdiv(N, TM),),
            in_specs=[
                pl.BlockSpec((TM, F), lambda i: (i, 0)),    # x row tile
                pl.BlockSpec((F, BC), lambda i: (0, 0)),    # permuted T
            ],
            out_specs=pl.BlockSpec((TM, BC), lambda i: (i, 0)),
        ),
        compiler_params=pltpu.CompilerParams(
            dimension_semantics=("parallel",)),
    )(x_in, t_perm)

    # ---- Kernel 2: pairwise L1 / exp reduction over j --------------------
    TI = N if N <= row_tile else row_tile
    TJ = N if N <= row_tile else row_tile
    grid = (pl.cdiv(N, TI), pl.cdiv(N, TJ))

    mbd = pl.pallas_call(
        _make_pairwise_kernel(N, B_dim, C_dim, TI, TJ),
        out_shape=jax.ShapeDtypeStruct((N, B_dim), jnp.float32),
        grid_spec=pltpu.PrefetchScalarGridSpec(
            num_scalar_prefetch=0,
            grid=grid,
            in_specs=[
                pl.BlockSpec((TI, BC), lambda i, j: (i, 0)),  # M rows, i-tile
                pl.BlockSpec((TJ, BC), lambda i, j: (j, 0)),  # M rows, j-tile
            ],
            out_specs=pl.BlockSpec((TI, B_dim), lambda i, j: (i, 0)),
        ),
        compiler_params=pltpu.CompilerParams(
            dimension_semantics=("parallel", "arbitrary")),
    )(M, M)

    # Passthrough concat with the exact f32 input (not the compute_dtype copy).
    return jnp.concatenate([x_flat, mbd], axis=1)


def _reference(inp_nchw, T, B_dim, C_dim):
    """Pure-JAX reference mirroring the PyTorch forward."""
    N = inp_nchw.shape[0]
    F = inp_nchw.shape[1] * inp_nchw.shape[2] * inp_nchw.shape[3]
    x = inp_nchw.reshape(N, F)
    M = x @ T                                                # (N, B*C)
    M3 = M.reshape(N, B_dim, C_dim)
    dist = jnp.abs(M3[:, None, :, :] - M3[None, :, :, :]).sum(-1)   # (N, N, B)
    mbd = jnp.exp(-dist).sum(1)                              # (N, B)
    return jnp.concatenate([x, mbd], axis=1)


if __name__ == "__main__":
    # Small shapes consistent with the module (spatial fixed at 4x4 by .view).
    num_channels = 4
    B_dim = 8
    C_dim = 4
    F = num_channels * 4 * 4

    key = jax.random.PRNGKey(0)
    k_inp, k_t, k_inp2 = jax.random.split(key, 3)

    # --- Case 1: tiny batch (single grid step) -----------------------------
    N = 2
    inp = jax.random.normal(k_inp, (N, num_channels, 4, 4), dtype=jnp.float32)
    T = jax.random.normal(k_t, (F, B_dim * C_dim), dtype=jnp.float32) * 0.1
    ref = _reference(inp, T, B_dim, C_dim)

    out_f32 = jax.block_until_ready(
        minibatch_discriminator_pallas(inp, T, B_dim, C_dim,
                                       compute_dtype=jnp.float32))
    np.testing.assert_allclose(np.asarray(out_f32), np.asarray(ref),
                               rtol=1e-5, atol=1e-5)

    out_bf16 = jax.block_until_ready(
        minibatch_discriminator_pallas(inp, T, B_dim, C_dim))
    np.testing.assert_allclose(np.asarray(out_bf16), np.asarray(ref),
                               rtol=5e-2, atol=5e-2)

    # --- Case 2: multi-tile grid with ragged last tiles (19 = 2*8 + 3) -----
    N2 = 19
    inp2 = jax.random.normal(k_inp2, (N2, num_channels, 4, 4),
                             dtype=jnp.float32)
    ref2 = _reference(inp2, T, B_dim, C_dim)
    out2 = jax.block_until_ready(
        minibatch_discriminator_pallas(inp2, T, B_dim, C_dim,
                                       compute_dtype=jnp.float32,
                                       row_tile=8))
    np.testing.assert_allclose(np.asarray(out2), np.asarray(ref2),
                               rtol=1e-5, atol=1e-5)

    print("KERNEL_OK")
</pallas_src>

<mosaic_0001>
module attributes {stable_mosaic.version = 11 : i64} {
  func.func @_project_kernel(%arg0: i32, %arg1: memref<2x64xf32, #tpu.memory_space<vmem>>, %arg2: memref<64x32xf32, #tpu.memory_space<vmem>>, %arg3: memref<2x32xf32, #tpu.memory_space<vmem>>) attributes {dimension_semantics = [#tpu.dimension_semantics<parallel>], iteration_bounds = array<i64: 1>, scalar_prefetch = 0 : i64, scratch_operands = 0 : i64, tpu.core_type = #tpu.core_type<tc>, window_params = [{transform_indices = @transform_0, window_bounds = array<i64: 2, 64>}, {pipeline_mode = #tpu.pipeline_mode<synchronous>, transform_indices = @transform_1, window_bounds = array<i64: 64, 32>}, {transform_indices = @transform_2, window_bounds = array<i64: 2, 32>}]} {
    %c0 = arith.constant 0 : index
    %c0_0 = arith.constant 0 : index
    %0 = vector.load %arg1[%c0, %c0_0] : memref<2x64xf32, #tpu.memory_space<vmem>>, vector<2x64xf32>
    %c0_1 = arith.constant 0 : index
    %c0_2 = arith.constant 0 : index
    %1 = vector.load %arg2[%c0_1, %c0_2] : memref<64x32xf32, #tpu.memory_space<vmem>>, vector<64x32xf32>
    %cst = arith.constant dense<0.000000e+00> : vector<2x32xf32>
    %2 = tpu.matmul %0, %1, %cst {dimension_numbers = #tpu.dot_dimension_numbers<[1], [0], [0], [1], [0, 0, 1, 1], [], []>} : vector<2x64xf32>, vector<64x32xf32>, vector<2x32xf32> -> vector<2x32xf32>
    %c0_3 = arith.constant 0 : index
    %c0_4 = arith.constant 0 : index
    %3 = vector.load %arg3[%c0_3, %c0_4] : memref<2x32xf32, #tpu.memory_space<vmem>>, vector<2x32xf32>
    tpu.vector_store %arg3[%c0_3, %c0_4], %2 {strides = array<i32>} : memref<2x32xf32, #tpu.memory_space<vmem>>, vector<2x32xf32>,
    return
  }
  func.func @transform_0(%arg0: i32) -> (i32, i32) {
    %c0_i32 = arith.constant 0 : i32
    %c0_i32_0 = arith.constant 0 : i32
    return %arg0, %c0_i32 : i32, i32
  }
  func.func @transform_1(%arg0: i32) -> (i32, i32) {
    %c0_i32 = arith.constant 0 : i32
    %c0_i32_0 = arith.constant 0 : i32
    %c0_i32_1 = arith.constant 0 : i32
    return %c0_i32, %c0_i32_0 : i32, i32
  }
  func.func @transform_2(%arg0: i32) -> (i32, i32) {
    %c0_i32 = arith.constant 0 : i32
    %c0_i32_0 = arith.constant 0 : i32
    return %arg0, %c0_i32 : i32, i32
  }
}

</mosaic_0001>

<bundles_post_ra>
// kernel: tpu_custom_call.1
= control target key start
LH: loop header
LB: loop body
LE: loop exit
PB: predicated region body
PF: predicated region fallthrough
CT: control target
= control target key end

     0   :  { %v180_v3 = vmov 0.0|0.0   ;;  %vm181_vm0 = vmmov 0   ;;  %v182_v6 = vmov 0.0   ;;  %s238_s0 = inlined_call_operand.vmem [shape: f32[2,64], index: 0, kind: input, shape index: {}]   ;;  %s239_s1 = inlined_call_operand.vmem [shape: f32[64,32], index: 1, kind: input, shape index: {}]   ;;  %s240_s2 = inlined_call_operand.hbm [shape: f32[2,32], index: 2, kind: output, shape index: {}]  }
   0x1   :  { %v13_v0 = vld [vmem:[%s239_s1] sm:$0xff]  ;;  %v14_v1 = vld [vmem:[%s239_s1 + $0x8] sm:$0xff]  ;;  %v15_v2 = vld [vmem:[%s239_s1 + $0x10] sm:$0xff]  ;;  %140 = vmatprep.subr.bf16.mxu0 %v180_v3  ;;  %137 = vmatprep.mubr.msk.f32.mxu0 %vm181_vm0, %v182_v6 }
   0x2   :  { %v141_v4 = vpack.c.bf16 %v14_v1, %v13_v0  ;;  %v16_v5 = vld [vmem:[%s239_s1 + $0x18] sm:$0xff] }
   0x3   :  { %v144_v7 = vpack.c.bf16 %v16_v5, %v15_v2 }
   0x4   :  { %142 = vmatpush3.bf16.msra.mxu0 %v141_v4 }
   0x5   :  { %7 = vsyncpa [#allocation3], 0  ;;  %143 = vmatprep.subr.bf16.mxu0 %v180_v3  ;;  %v17_v8 = vld [vmem:[%s239_s1 + $0x20] sm:$0xff]  ;;  %v18_v9 = vld [vmem:[%s239_s1 + $0x28] sm:$0xff]  ;;  %vm21_vm1 = vcmask 523264   ;;  %s183_s27 = smov [#allocation2]  }
   0x6   :  { %v147_v10 = vpack.c.bf16 %v18_v9, %v17_v8  ;;  %v19_v11 = vld [vmem:[%s239_s1 + $0x30] sm:$0xff]  ;;  %v20_v12 = vld [vmem:[%s239_s1 + $0x38] sm:$0xff]  ;;  %v12_v14 = vld [vmem:[%s238_s0] sm:$0x3]  ;;  %s103_s28 = sshll.u32 %s183_s27, 4  ;;  %vm95_vm2 = vcmask 254976   ;;  %s104_s28 = int_to_ptr.vmem [resolvable:$true] %s103_s28 }
   0x7   :  { %v150_v13 = vpack.c.bf16 %v20_v12, %v19_v11  ;;  %s156_s29 = scalar_lea.vmem %s104_s28, 32  ;;  %p161_p1 = scmp.lt.s32.totalorder %s104_s28, %s104_s28 }
   0x8   :  { %145 = vmatpush3.bf16.msra.mxu0 %v144_v7  ;;  %p157_p0 = scmp.ne.s32.totalorder %s104_s28, %s156_s29  ;;  %p162_p2 = scmp.lt.s32.totalorder %s156_s29, %s156_s29 }
   0x9   :  { %146 = vmatprep.subr.bf16.mxu0 %v180_v3 }
   0xa   :  { %p163_p3 = por %p162_p2, %p161_p1 }
   0xc   :  { %148 = vmatpush3.bf16.msra.mxu0 %v147_v10  ;;  %p164_p4 = pnand %p163_p3, %p157_p0 }
   0xd   :  { %149 = vmatprep.subr.bf16.mxu0 %v180_v3 }
  0x10   :  { %151 = vmatpush3.bf16.msra.mxu0 %v150_v13 }
  0x13   :  { %138 = vmatmul.mubr.msk.f32.vlgmr.msra.gmra.mrb[0].mxu0 %vm21_vm1, %v12_v14 }
  0xe6   :  { %v91_v15 = vpop.f32.mrb[0].mxu0 }
  0xe7   :  { %96 = vst.msk [vmem:[#allocation2] sm:$0x3] %vm95_vm2, %v91_v15  ;;  %v139_v16 = vpop.f32.mrb[1].mxu0 }
  0xe8   :  { %167 = shalt.err (!%p164_p4)
}
  0xe9   :  { %s168_s0 = scalar_lea.hbm %s240_s2, 32 }
  0xea   :  { %p169_p5 = scmp.ne.s32.totalorder %s240_s2, %s168_s0  ;;  %p172_p6 = scmp.lt.u32.totalorder %s168_s0, %s240_s2 }
  0xec   :  { %p174_p7 = pnand %p172_p6, %p169_p5 }
  0xee   :  { %177 = shalt.err (!%p174_p7)
}
  0xef   :  { %106 = dma.vmem_to_hbm [thread:$0]  %s104_s28, 32, %s240_s2, [#allocation3]  }
  0xf0   :  { %178 = dma.done.wait [#allocation3], 32  }
  0xf1   :  { %179 = vsyncadd [#allocation3], 4294967264 }
  0xf2   :  { %110 = vsyncpa [#allocation3], 1 }

</bundles_post_ra>
